<compile_context>
chip_gen: v7x
topology: tpu7x:2x2x1
jax: 0.10.0
libtpu: 0.0.40
codegen_flags: <defaults>
</compile_context>

<pallas_src>
import numpy as np
import jax
import jax.numpy as jnp
from jax.experimental import pallas as pl
from jax.experimental.pallas import tpu as pltpu


# ----------------------------------------------------------------------------
# Deterministic weight construction (mirrors the PyTorch module's __init__).
# ----------------------------------------------------------------------------
def compute_padding(kernel_size: int) -> int:
    return kernel_size // 2 - 1 if kernel_size % 2 == 0 else kernel_size // 2


def fill_weights_nn(r: int, s: int) -> np.ndarray:
    k = s
    w = np.zeros((r * r, k, k), np.float32)
    a = s / r
    nn = np.round(np.linspace(a / 2, s - 1 - a / 2, r)).astype(int)
    nx, ny = np.meshgrid(nn, nn)
    for r_i, (y, x) in enumerate(zip(nx.flatten(), ny.flatten())):
        w[r_i, x, y] = 1.0
    return w


def fill_weights_bilinear(r: int, s: int) -> np.ndarray:
    k = s
    w = np.zeros((r * r, k, k), np.float32)
    a = s / r
    nn = np.linspace(a / 2, s - 1 - a / 2, r)
    nx, ny = np.meshgrid(nn, nn)
    for r_i, (y, x) in enumerate(zip(nx.flatten(), ny.flatten())):
        x0, x1 = int(np.floor(x)), int(np.ceil(x))
        y0, y1 = int(np.floor(y)), int(np.ceil(y))
        if x1 == x0:
            x1 += 1
        if y1 == y0:
            y1 += 1
        w[r_i, x0, y0] = (x1 - x) * (y1 - y)
        if y1 < k:
            w[r_i, x0, y1] = (x1 - x) * (y - y0)
        if x1 < k:
            w[r_i, x1, y0] = (x - x0) * (y1 - y)
        if x1 < k and y1 < k:
            w[r_i, x1, y1] = (x - x0) * (y - y0)
    return w


_WEIGHT_FILLERS = {"nearest": fill_weights_nn, "bilinear": fill_weights_bilinear}


# ----------------------------------------------------------------------------
# Generation-aware tile sizing.
# ----------------------------------------------------------------------------
_LANE = 128


def _round_up(x: int, m: int) -> int:
    return -(-x // m) * m


def _vmem_capacity_bytes() -> int:
    try:
        info = pltpu.get_tpu_info()
        cap = getattr(info, "vmem_capacity_bytes", None)
        if cap:
            return int(cap)
    except Exception:
        pass
    return 128 * 1024 * 1024  # v5e/v6e-style default


def _choose_tiles(B, Ho, Wo, r, s, C, esize, vmem_cap, hb_cap=4):
    lane_in = _round_up(s * C, _LANE)      # lane-padded input block width
    lane_out = _round_up(r * C, _LANE)     # lane-padded output block width
    sub = max(8, 32 // esize)              # sublane tile multiple for dtype

    def pipeline_bytes(hb, tw):
        twp = _round_up(tw, sub)
        b_in = hb * s * twp * lane_in * esize
        b_out = hb * r * twp * lane_out * esize
        return 2 * (b_in + b_out)          # x2: double-buffered pipeline

    def temp_bytes(hb, tw):
        # f32 working set inside the kernel: k loaded rows + up to k*k cached
        # taps + ~r live accumulators.  A Python hb-loop does not bound live
        # ranges, so charge up to two iterations' worth.
        twp = _round_up(tw, 8)
        per_hb = (s + s * s) * twp * lane_in * 4 + (r + 2) * twp * lane_out * 4
        return min(hb, 2) * per_hb

    def live(hb, tw):
        return pipeline_bytes(hb, tw) + temp_bytes(hb, tw)

    # Generation-aware pipeline budget (big tiles on 128 MiB parts, tighter on
    # v7x's 64 MiB physical VMEM).
    budget = (40 << 20) if vmem_cap >= (96 << 20) else (18 << 20)
    budget = min(budget, int(0.45 * vmem_cap))

    # TW: multiple of the sublane tile (or the full Wo) so the (8,128) block
    # rule always holds; pick the largest one that fits the budget.
    cands = [d for d in range(Wo, 0, -1)
             if Wo % d == 0 and (d % sub == 0 or d == Wo)]
    TW = None
    for d in cands:
        if live(1, d) <= budget:
            TW = d
            break
    if TW is None:
        TW = cands[-1]  # smallest legal divisor (see TODO about masked tiles)

    Hb = 1
    for d in range(min(hb_cap, Ho), 0, -1):
        if Ho % d == 0 and live(d, TW) <= budget:
            Hb = d
            break

    # Make sure both v7x TensorCores get work when possible (negligible cost
    # on single-TC chips: at most one extra grid step).
    if B * (Ho // Hb) * (Wo // TW) < 2:
        if Ho >= 2 and Ho // Hb < 2:
            for d in range(Hb - 1, 0, -1):
                if Ho % d == 0 and Ho // d >= 2:
                    Hb = d
                    break
        elif Wo // TW < 2:
            smaller = [d for d in cands if d < TW]
            if smaller:
                TW = smaller[0]

    return Hb, TW, live(Hb, TW)


# ----------------------------------------------------------------------------
# Pallas kernel: weighted tap accumulation with fused pixel-shuffle layout.
# ----------------------------------------------------------------------------
def _make_kernel(r: int, s: int, weights: np.ndarray, Hb: int, TW: int, C: int):
    k = s
    w = np.asarray(weights, np.float32).reshape(r * r, k, k)
    dense_c = (C % 128 == 0)  # lane-aligned per-sub-pixel slice stores

    def kernel(x_ref, o_ref):
        # x_ref: (1, Hb*s, TW, s*C)  -- column taps folded into the lane dim
        # o_ref: (1, Hb, r, TW, r*C) -- sub-pixel columns folded into the lane dim
        for hb in range(Hb):
            rows = {}
            taps = {}

            def tap(u, v, _hb=hb):
                if (u, v) not in taps:
                    if u not in rows:  # one full-row VMEM load per (hb, u)
                        rows[u] = x_ref[0, _hb * s + u, :, :]
                    taps[(u, v)] = rows[u][:, v * C:(v + 1) * C].astype(jnp.float32)
                return taps[(u, v)]

            for i in range(r):
                parts = []
                for j in range(r):
                    m = i * r + j
                    acc = None
                    for u in range(k):
                        for v in range(k):
                            wv = float(w[m, u, v])
                            if wv == 0.0:
                                continue
                            t = tap(u, v)
                            term = t if wv == 1.0 else wv * t  # nearest: pure copy
                            acc = term if acc is None else acc + term
                    if acc is None:
                        acc = jnp.zeros((TW, C), jnp.float32)
                    acc = acc.astype(o_ref.dtype)
                    if dense_c:
                        # lane-aligned (unmasked) direct store, no concatenate temp
                        o_ref[0, hb, i, :, j * C:(j + 1) * C] = acc
                    else:
                        parts.append(acc)
                if not dense_c:
                    row = parts[0] if r == 1 else jnp.concatenate(parts, axis=-1)
                    o_ref[0, hb, i, :, :] = row  # one full-lane-extent store

    return kernel


def fractional_scale_2d(x, r: int, s: int, scaling_mode: str = "nearest"):
    """Equivalent of FullyConvolutionalFractionalScaling2D.forward (NHWC in/out)."""
    if scaling_mode == "bicubic":
        raise NotImplementedError(
            "bicubic mode (kernel_size = s + 1, overlapping windows) is not "
            "supported by this non-overlapping row-group blocking")
    if scaling_mode not in _WEIGHT_FILLERS:
        raise ValueError(f"unknown scaling_mode: {scaling_mode!r}")

    reduce_dim = False
    if x.ndim == 3:
        reduce_dim = True
        x = x[None]
    B, H, W, C = x.shape

    weights = _WEIGHT_FILLERS[scaling_mode](r, s)  # (r*r, k, k)
    k = s
    p = compute_padding(k)
    Ho = (H + 2 * p - k) // s + 1
    Wo = (W + 2 * p - k) // s + 1

    # Replicate padding (padding_mode='replicate') + crop to the rows/cols the
    # conv windows touch. Only copies when padding/cropping is actually needed.
    if p == 0 and Ho * s == H and Wo * s == W:
        xu = x
    else:
        xp_ = jnp.pad(x, ((0, 0), (p, p), (p, p), (0, 0)), mode="edge")
        xu = xp_[:, : Ho * s, : Wo * s, :]

    # Free, contiguous reshape (no HBM transpose): fold column taps into lanes.
    xw = xu.reshape(B, Ho * s, Wo, s * C)

    esize = jnp.dtype(x.dtype).itemsize
    vmem_cap = _vmem_capacity_bytes()
    Hb, TW, live = _choose_tiles(B, Ho, Wo, r, s, C, esize, vmem_cap)
    grid = (B, Ho // Hb, Wo // TW)

    vmem_limit = max(32 << 20, live + (6 << 20))
    vmem_limit = min(vmem_limit, int(0.8 * vmem_cap))
    vmem_limit = int(max(vmem_limit, live + (2 << 20)))  # never declare < usage

    out = pl.pallas_call(
        _make_kernel(r, s, weights, Hb, TW, C),
        out_shape=jax.ShapeDtypeStruct((B, Ho, r, Wo, r * C), x.dtype),
        grid_spec=pltpu.PrefetchScalarGridSpec(
            num_scalar_prefetch=0,
            grid=grid,
            in_specs=[
                pl.BlockSpec((1, Hb * s, TW, s * C), lambda b, h, wt: (b, h, wt, 0)),
            ],
            out_specs=pl.BlockSpec(
                (1, Hb, r, TW, r * C), lambda b, h, wt: (b, h, 0, wt, 0)
            ),
        ),
        compiler_params=pltpu.CompilerParams(
            dimension_semantics=("parallel", "parallel", "parallel"),
            vmem_limit_bytes=vmem_limit,
        ),
    )(xw)

    # Fused PixelShuffle: (B, Ho, r, Wo, r, C) flattening == (B, Ho*r, Wo*r, C),
    # so this is a pure reshape (no extra HBM transpose pass).
    out = out.reshape(B, Ho * r, Wo * r, C)
    if reduce_dim:
        out = out[0]
    return out


# ----------------------------------------------------------------------------
# Pure-JAX reference (mirrors the torch conv3d + pixelshuffle path exactly).
# ----------------------------------------------------------------------------
def reference(x, r: int, s: int, scaling_mode: str = "nearest"):
    if x.ndim == 3:
        return reference(x[None], r, s, scaling_mode)[0]
    B, H, W, C = x.shape
    w = _WEIGHT_FILLERS[scaling_mode](r, s)
    k = s
    p = compute_padding(k)
    xp = jnp.pad(x, ((0, 0), (p, p), (p, p), (0, 0)), mode="edge")
    xm = xp.transpose(0, 3, 1, 2).reshape(B * C, 1, H + 2 * p, W + 2 * p)
    y = jax.lax.conv_general_dilated(
        xm,
        jnp.asarray(w)[:, None, :, :],
        window_strides=(s, s),
        padding="VALID",
        dimension_numbers=("NCHW", "OIHW", "NCHW"),
    )
    Ho, Wo = y.shape[2], y.shape[3]
    y = (
        y.reshape(B, C, r, r, Ho, Wo)
        .transpose(0, 1, 4, 2, 5, 3)  # (B, C, Ho, i, Wo, j)
        .reshape(B, C, Ho * r, Wo * r)
    )
    return y.transpose(0, 2, 3, 1)  # back to NHWC


if __name__ == "__main__":
    key = jax.random.PRNGKey(0)
    x = jax.random.normal(key, (2, 12, 12, 4), jnp.float32)

    configs = [
        (3, 2, "nearest"),   # upscale by 3/2, even kernel (p = 0, no pad copy)
        (2, 3, "bilinear"),  # downscale by 2/3, odd kernel (replicate pad p = 1)
    ]
    for r, s, mode in configs:
        out = jax.block_until_ready(fractional_scale_2d(x, r, s, mode))
        ref = jax.block_until_ready(reference(x, r, s, mode))
        assert out.shape == ref.shape, (out.shape, ref.shape)
        assert np.allclose(np.asarray(out), np.asarray(ref), atol=1e-5), mode

    # 3-D (H, W, C) input path (reduce_dim branch of forward)
    out3 = jax.block_until_ready(fractional_scale_2d(x[0], 3, 2, "nearest"))
    ref3 = reference(x[0], 3, 2, "nearest")
    assert out3.shape == (18, 18, 4), out3.shape
    assert np.allclose(np.asarray(out3), np.asarray(ref3), atol=1e-5)

    print("KERNEL_OK")
</pallas_src>

<mosaic_0001>
module attributes {stable_mosaic.version = 11 : i64} {
  func.func @kernel(%arg0: i32, %arg1: i32, %arg2: i32, %arg3: memref<1x6x6x8xf32, #tpu.memory_space<vmem>>, %arg4: memref<1x3x3x6x12xf32, #tpu.memory_space<vmem>>) attributes {dimension_semantics = [#tpu.dimension_semantics<parallel>, #tpu.dimension_semantics<parallel>, #tpu.dimension_semantics<parallel>], iteration_bounds = array<i64: 2, 2, 1>, scalar_prefetch = 0 : i64, scratch_operands = 0 : i64, tpu.core_type = #tpu.core_type<tc>, window_params = [{transform_indices = @transform_0, window_bounds = array<i64: 1, 6, 6, 8>}, {transform_indices = @transform_1, window_bounds = array<i64: 1, 3, 3, 6, 12>}]} {
    %c0 = arith.constant 0 : index
    %c0_0 = arith.constant 0 : index
    %c0_1 = arith.constant 0 : index
    %c0_2 = arith.constant 0 : index
    %0 = vector.load %arg3[%c0, %c0_0, %c0_1, %c0_2] : memref<1x6x6x8xf32, #tpu.memory_space<vmem>>, vector<1x1x6x8xf32>
    %1 = vector.shape_cast %0 : vector<1x1x6x8xf32> to vector<6x8xf32>
    %2 = vector.extract_strided_slice %1 {offsets = [0, 0], sizes = [6, 4], strides = [1, 1]} : vector<6x8xf32> to vector<6x4xf32>
    %3 = vector.extract_strided_slice %1 {offsets = [0, 4], sizes = [6, 4], strides = [1, 1]} : vector<6x8xf32> to vector<6x4xf32>
    %4 = tpu.concatenate %2, %2, %3 in 1 : vector<6x4xf32>, vector<6x4xf32>, vector<6x4xf32> -> vector<6x12xf32>
    %c0_3 = arith.constant 0 : index
    %c0_4 = arith.constant 0 : index
    %c0_5 = arith.constant 0 : index
    %c0_6 = arith.constant 0 : index
    %c0_7 = arith.constant 0 : index
    %5 = vector.load %arg4[%c0_3, %c0_4, %c0_5, %c0_6, %c0_7] : memref<1x3x3x6x12xf32, #tpu.memory_space<vmem>>, vector<1x1x1x6x12xf32>
    %6 = vector.shape_cast %5 : vector<1x1x1x6x12xf32> to vector<6x12xf32>
    %7 = vector.shape_cast %4 : vector<6x12xf32> to vector<1x1x1x6x12xf32>
    tpu.vector_store %arg4[%c0_3, %c0_4, %c0_5, %c0_6, %c0_7], %7 {strides = array<i32>} : memref<1x3x3x6x12xf32, #tpu.memory_space<vmem>>, vector<1x1x1x6x12xf32>,
    %8 = tpu.concatenate %2, %2, %3 in 1 : vector<6x4xf32>, vector<6x4xf32>, vector<6x4xf32> -> vector<6x12xf32>
    %c0_8 = arith.constant 0 : index
    %c0_9 = arith.constant 0 : index
    %c1 = arith.constant 1 : index
    %c0_10 = arith.constant 0 : index
    %c0_11 = arith.constant 0 : index
    %9 = vector.load %arg4[%c0_8, %c0_9, %c1, %c0_10, %c0_11] : memref<1x3x3x6x12xf32, #tpu.memory_space<vmem>>, vector<1x1x1x6x12xf32>
    %10 = vector.shape_cast %9 : vector<1x1x1x6x12xf32> to vector<6x12xf32>
    %11 = vector.shape_cast %8 : vector<6x12xf32> to vector<1x1x1x6x12xf32>
    tpu.vector_store %arg4[%c0_8, %c0_9, %c1, %c0_10, %c0_11], %11 {strides = array<i32>} : memref<1x3x3x6x12xf32, #tpu.memory_space<vmem>>, vector<1x1x1x6x12xf32>,
    %c0_12 = arith.constant 0 : index
    %c1_13 = arith.constant 1 : index
    %c0_14 = arith.constant 0 : index
    %c0_15 = arith.constant 0 : index
    %12 = vector.load %arg3[%c0_12, %c1_13, %c0_14, %c0_15] : memref<1x6x6x8xf32, #tpu.memory_space<vmem>>, vector<1x1x6x8xf32>
    %13 = vector.shape_cast %12 : vector<1x1x6x8xf32> to vector<6x8xf32>
    %14 = vector.extract_strided_slice %13 {offsets = [0, 0], sizes = [6, 4], strides = [1, 1]} : vector<6x8xf32> to vector<6x4xf32>
    %15 = vector.extract_strided_slice %13 {offsets = [0, 4], sizes = [6, 4], strides = [1, 1]} : vector<6x8xf32> to vector<6x4xf32>
    %16 = tpu.concatenate %14, %14, %15 in 1 : vector<6x4xf32>, vector<6x4xf32>, vector<6x4xf32> -> vector<6x12xf32>
    %c0_16 = arith.constant 0 : index
    %c0_17 = arith.constant 0 : index
    %c2 = arith.constant 2 : index
    %c0_18 = arith.constant 0 : index
    %c0_19 = arith.constant 0 : index
    %17 = vector.load %arg4[%c0_16, %c0_17, %c2, %c0_18, %c0_19] : memref<1x3x3x6x12xf32, #tpu.memory_space<vmem>>, vector<1x1x1x6x12xf32>
    %18 = vector.shape_cast %17 : vector<1x1x1x6x12xf32> to vector<6x12xf32>
    %19 = vector.shape_cast %16 : vector<6x12xf32> to vector<1x1x1x6x12xf32>
    tpu.vector_store %arg4[%c0_16, %c0_17, %c2, %c0_18, %c0_19], %19 {strides = array<i32>} : memref<1x3x3x6x12xf32, #tpu.memory_space<vmem>>, vector<1x1x1x6x12xf32>,
    %c0_20 = arith.constant 0 : index
    %c2_21 = arith.constant 2 : index
    %c0_22 = arith.constant 0 : index
    %c0_23 = arith.constant 0 : index
    %20 = vector.load %arg3[%c0_20, %c2_21, %c0_22, %c0_23] : memref<1x6x6x8xf32, #tpu.memory_space<vmem>>, vector<1x1x6x8xf32>
    %21 = vector.shape_cast %20 : vector<1x1x6x8xf32> to vector<6x8xf32>
    %22 = vector.extract_strided_slice %21 {offsets = [0, 0], sizes = [6, 4], strides = [1, 1]} : vector<6x8xf32> to vector<6x4xf32>
    %23 = vector.extract_strided_slice %21 {offsets = [0, 4], sizes = [6, 4], strides = [1, 1]} : vector<6x8xf32> to vector<6x4xf32>
    %24 = tpu.concatenate %22, %22, %23 in 1 : vector<6x4xf32>, vector<6x4xf32>, vector<6x4xf32> -> vector<6x12xf32>
    %c0_24 = arith.constant 0 : index
    %c1_25 = arith.constant 1 : index
    %c0_26 = arith.constant 0 : index
    %c0_27 = arith.constant 0 : index
    %c0_28 = arith.constant 0 : index
    %25 = vector.load %arg4[%c0_24, %c1_25, %c0_26, %c0_27, %c0_28] : memref<1x3x3x6x12xf32, #tpu.memory_space<vmem>>, vector<1x1x1x6x12xf32>
    %26 = vector.shape_cast %25 : vector<1x1x1x6x12xf32> to vector<6x12xf32>
    %27 = vector.shape_cast %24 : vector<6x12xf32> to vector<1x1x1x6x12xf32>
    tpu.vector_store %arg4[%c0_24, %c1_25, %c0_26, %c0_27, %c0_28], %27 {strides = array<i32>} : memref<1x3x3x6x12xf32, #tpu.memory_space<vmem>>, vector<1x1x1x6x12xf32>,
    %28 = tpu.concatenate %22, %22, %23 in 1 : vector<6x4xf32>, vector<6x4xf32>, vector<6x4xf32> -> vector<6x12xf32>
    %c0_29 = arith.constant 0 : index
    %c1_30 = arith.constant 1 : index
    %c1_31 = arith.constant 1 : index
    %c0_32 = arith.constant 0 : index
    %c0_33 = arith.constant 0 : index
    %29 = vector.load %arg4[%c0_29, %c1_30, %c1_31, %c0_32, %c0_33] : memref<1x3x3x6x12xf32, #tpu.memory_space<vmem>>, vector<1x1x1x6x12xf32>
    %30 = vector.shape_cast %29 : vector<1x1x1x6x12xf32> to vector<6x12xf32>
    %31 = vector.shape_cast %28 : vector<6x12xf32> to vector<1x1x1x6x12xf32>
    tpu.vector_store %arg4[%c0_29, %c1_30, %c1_31, %c0_32, %c0_33], %31 {strides = array<i32>} : memref<1x3x3x6x12xf32, #tpu.memory_space<vmem>>, vector<1x1x1x6x12xf32>,
    %c0_34 = arith.constant 0 : index
    %c3 = arith.constant 3 : index
    %c0_35 = arith.constant 0 : index
    %c0_36 = arith.constant 0 : index
    %32 = vector.load %arg3[%c0_34, %c3, %c0_35, %c0_36] : memref<1x6x6x8xf32, #tpu.memory_space<vmem>>, vector<1x1x6x8xf32>
    %33 = vector.shape_cast %32 : vector<1x1x6x8xf32> to vector<6x8xf32>
    %34 = vector.extract_strided_slice %33 {offsets = [0, 0], sizes = [6, 4], strides = [1, 1]} : vector<6x8xf32> to vector<6x4xf32>
    %35 = vector.extract_strided_slice %33 {offsets = [0, 4], sizes = [6, 4], strides = [1, 1]} : vector<6x8xf32> to vector<6x4xf32>
    %36 = tpu.concatenate %34, %34, %35 in 1 : vector<6x4xf32>, vector<6x4xf32>, vector<6x4xf32> -> vector<6x12xf32>
    %c0_37 = arith.constant 0 : index
    %c1_38 = arith.constant 1 : index
    %c2_39 = arith.constant 2 : index
    %c0_40 = arith.constant 0 : index
    %c0_41 = arith.constant 0 : index
    %37 = vector.load %arg4[%c0_37, %c1_38, %c2_39, %c0_40, %c0_41] : memref<1x3x3x6x12xf32, #tpu.memory_space<vmem>>, vector<1x1x1x6x12xf32>
    %38 = vector.shape_cast %37 : vector<1x1x1x6x12xf32> to vector<6x12xf32>
    %39 = vector.shape_cast %36 : vector<6x12xf32> to vector<1x1x1x6x12xf32>
    tpu.vector_store %arg4[%c0_37, %c1_38, %c2_39, %c0_40, %c0_41], %39 {strides = array<i32>} : memref<1x3x3x6x12xf32, #tpu.memory_space<vmem>>, vector<1x1x1x6x12xf32>,
    %c0_42 = arith.constant 0 : index
    %c4 = arith.constant 4 : index
    %c0_43 = arith.constant 0 : index
    %c0_44 = arith.constant 0 : index
    %40 = vector.load %arg3[%c0_42, %c4, %c0_43, %c0_44] : memref<1x6x6x8xf32, #tpu.memory_space<vmem>>, vector<1x1x6x8xf32>
    %41 = vector.shape_cast %40 : vector<1x1x6x8xf32> to vector<6x8xf32>
    %42 = vector.extract_strided_slice %41 {offsets = [0, 0], sizes = [6, 4], strides = [1, 1]} : vector<6x8xf32> to vector<6x4xf32>
    %43 = vector.extract_strided_slice %41 {offsets = [0, 4], sizes = [6, 4], strides = [1, 1]} : vector<6x8xf32> to vector<6x4xf32>
    %44 = tpu.concatenate %42, %42, %43 in 1 : vector<6x4xf32>, vector<6x4xf32>, vector<6x4xf32> -> vector<6x12xf32>
    %c0_45 = arith.constant 0 : index
    %c2_46 = arith.constant 2 : index
    %c0_47 = arith.constant 0 : index
    %c0_48 = arith.constant 0 : index
    %c0_49 = arith.constant 0 : index
    %45 = vector.load %arg4[%c0_45, %c2_46, %c0_47, %c0_48, %c0_49] : memref<1x3x3x6x12xf32, #tpu.memory_space<vmem>>, vector<1x1x1x6x12xf32>
    %46 = vector.shape_cast %45 : vector<1x1x1x6x12xf32> to vector<6x12xf32>
    %47 = vector.shape_cast %44 : vector<6x12xf32> to vector<1x1x1x6x12xf32>
    tpu.vector_store %arg4[%c0_45, %c2_46, %c0_47, %c0_48, %c0_49], %47 {strides = array<i32>} : memref<1x3x3x6x12xf32, #tpu.memory_space<vmem>>, vector<1x1x1x6x12xf32>,
    %48 = tpu.concatenate %42, %42, %43 in 1 : vector<6x4xf32>, vector<6x4xf32>, vector<6x4xf32> -> vector<6x12xf32>
    %c0_50 = arith.constant 0 : index
    %c2_51 = arith.constant 2 : index
    %c1_52 = arith.constant 1 : index
    %c0_53 = arith.constant 0 : index
    %c0_54 = arith.constant 0 : index
    %49 = vector.load %arg4[%c0_50, %c2_51, %c1_52, %c0_53, %c0_54] : memref<1x3x3x6x12xf32, #tpu.memory_space<vmem>>, vector<1x1x1x6x12xf32>
    %50 = vector.shape_cast %49 : vector<1x1x1x6x12xf32> to vector<6x12xf32>
    %51 = vector.shape_cast %48 : vector<6x12xf32> to vector<1x1x1x6x12xf32>
    tpu.vector_store %arg4[%c0_50, %c2_51, %c1_52, %c0_53, %c0_54], %51 {strides = array<i32>} : memref<1x3x3x6x12xf32, #tpu.memory_space<vmem>>, vector<1x1x1x6x12xf32>,
    %c0_55 = arith.constant 0 : index
    %c5 = arith.constant 5 : index
    %c0_56 = arith.constant 0 : index
    %c0_57 = arith.constant 0 : index
    %52 = vector.load %arg3[%c0_55, %c5, %c0_56, %c0_57] : memref<1x6x6x8xf32, #tpu.memory_space<vmem>>, vector<1x1x6x8xf32>
    %53 = vector.shape_cast %52 : vector<1x1x6x8xf32> to vector<6x8xf32>
    %54 = vector.extract_strided_slice %53 {offsets = [0, 0], sizes = [6, 4], strides = [1, 1]} : vector<6x8xf32> to vector<6x4xf32>
    %55 = vector.extract_strided_slice %53 {offsets = [0, 4], sizes = [6, 4], strides = [1, 1]} : vector<6x8xf32> to vector<6x4xf32>
    %56 = tpu.concatenate %54, %54, %55 in 1 : vector<6x4xf32>, vector<6x4xf32>, vector<6x4xf32> -> vector<6x12xf32>
    %c0_58 = arith.constant 0 : index
    %c2_59 = arith.constant 2 : index
    %c2_60 = arith.constant 2 : index
    %c0_61 = arith.constant 0 : index
    %c0_62 = arith.constant 0 : index
    %57 = vector.load %arg4[%c0_58, %c2_59, %c2_60, %c0_61, %c0_62] : memref<1x3x3x6x12xf32, #tpu.memory_space<vmem>>, vector<1x1x1x6x12xf32>
    %58 = vector.shape_cast %57 : vector<1x1x1x6x12xf32> to vector<6x12xf32>
    %59 = vector.shape_cast %56 : vector<6x12xf32> to vector<1x1x1x6x12xf32>
    tpu.vector_store %arg4[%c0_58, %c2_59, %c2_60, %c0_61, %c0_62], %59 {strides = array<i32>} : memref<1x3x3x6x12xf32, #tpu.memory_space<vmem>>, vector<1x1x1x6x12xf32>,
    return
  }
  func.func @transform_0(%arg0: i32, %arg1: i32, %arg2: i32) -> (i32, i32, i32, i32) {
    %c0_i32 = arith.constant 0 : i32
    %c0_i32_0 = arith.constant 0 : i32
    return %arg0, %arg1, %arg2, %c0_i32 : i32, i32, i32, i32
  }
  func.func @transform_1(%arg0: i32, %arg1: i32, %arg2: i32) -> (i32, i32, i32, i32, i32) {
    %c0_i32 = arith.constant 0 : i32
    %c0_i32_0 = arith.constant 0 : i32
    %c0_i32_1 = arith.constant 0 : i32
    return %arg0, %arg1, %c0_i32, %arg2, %c0_i32_0 : i32, i32, i32, i32, i32
  }
}

</mosaic_0001>

<bundles_post_ra>
// kernel: tpu_custom_call.1
= control target key start
LH: loop header
LB: loop body
LE: loop exit
PB: predicated region body
PF: predicated region fallthrough
CT: control target
= control target key end

     0   :  { %s480_s6 = smov 0   ;;  %s482_s7 = smov 0   ;;  %s556_s0 = inlined_call_operand.vmem [shape: f32[2,12,6,8], index: 0, kind: input, shape index: {}]   ;;  %s557_s1 = inlined_call_operand.vmem [shape: f32[2,6,3,6,12], index: 1, kind: output, shape index: {}]  }
   0x1   :  { %s484_s8 = smov 0   ;;  %s486_s9 = smov 0  }
   0x2   :  { %s488_s10 = smov 0  }
   0x3 LB: > { %s26_s11 = sadd.s32 1, %s459_s8  ;;  %s30_s12 = sadd.s32 1, %s463_s9  ;;  %s467_s10 = sphi %s488_s10, %s11_s10   ;;  %s463_s9 = sphi %s486_s9, %s561_s9   ;;  %s459_s8 = sphi %s484_s8, %s560_s8   ;;  %s455_s7 = sphi %s482_s7, %s559_s7   ;;  %s451_s6 = sphi %s480_s6, %s558_s6  }
   0x4   : > { %p28_p0 = scmp.ge.s32.totalorder %s26_s11, 2  ;;  %p367_p1 = scmp.ge.s32.totalorder %s467_s10, 1 }
   0x5   : > { %p122_p2 = scmp.lt.s32.totalorder %s467_s10, 5 }
   0x6   : > { %s563_s11 = smov (%p28_p0, %s26_s11), 0  ;;  %s565_s12 = smov (!%p28_p0, %s30_s12), %s463_s9 }
   0x7   : > { %p123_p3 = pnand %p367_p1, %p122_p2  ;;  %p32_p4 = scmp.ge.s32.totalorder %s565_s12, 2 }
   0x8   : > { %s157_s13 = smul.u32 (!%p123_p3), 6, %s451_s6  ;;  %p158_p5 = scmp.lt.s32.totalorder (!%p123_p3), %s455_s7, 1  ;;  %vm189_vm0 = vcmask (!%p123_p3), 31744   ;;  %vm191_vm1 = vcmask (!%p123_p3), 64512   ;;  %vm193_vm2 = vcmask (!%p123_p3), 95232  }
   0x9   : > { %s567_s12 = smov (%p32_p4, %s565_s12), 0  ;;  %126 = sbr.rel (%p123_p3) target bundleno = 150 (0x96), region = 24 }
   0xa   : > { %p160_p6 = scmp.lt.s32.totalorder (!%p123_p3), %s157_s13, 11  ;;  %s469_s20 = smov (!%p123_p3), 4  }
   0xb   : > { %s170_s21 = smul.u32 (!%p123_p3), 3, %s451_s6 }
   0xd   : > { %p173_p7 = scmp.lt.s32.totalorder (!%p123_p3), %s170_s21, 5 }
  0x10   : > { %s569_s7 = smov (!%p158_p5, %s455_s7), 1  ;;  %s571_s13 = smov (!%p160_p6, %s157_s13), 11 }
  0x11   : > { %s385_s14 = smul.u32 12, %s569_s7  ;;  %s573_s21 = smov (!%p173_p7, %s170_s21), 5 }
  0x12   : > { %s387_s22 = smul.u32 18, %s569_s7 }
  0x13   : > { %s166_s15 = sadd.s32 %s385_s14, %s571_s13  ;;  %s386_s23 = smul.u32 3, %s573_s21 }
  0x14   : > { %s368_s16 = sshll.u32 %s166_s15, 3 }
  0x15   : > { %s168_s19 = scalar_lea.vmem %s556_s0, %s368_s16  ;;  %s180_s24 = sadd.s32 %s387_s22, %s386_s23 }
  0x16   : > { %v373_v0 = vld [vmem:[%s168_s19 + $0x10] sm:$0x3f]  ;;  %v184_v1 = vld [vmem:[%s168_s19] sm:$0x3f]  ;;  %v376_v2 = vld [vmem:[%s168_s19 + $0x18] sm:$0x3f] }
  0x17   : > { %210 = vrot.lane.b32.xlu1 %v373_v0, %s469_s20  ;;  %186 = vrot.lane.b32.xlu0 %v184_v1, %s469_s20  ;;  %v371_v3 = vld [vmem:[%s168_s19 + $0x8] sm:$0x3f]  ;;  %v378_v5 = vld [vmem:[%s168_s19 + $0x20] sm:$0x3f]  ;;  %s369_s25 = sshll.u32 %s180_s24, 3 }
  0x18   : > { %v381_v4 = vld [vmem:[%s168_s19 + $0x28] sm:$0x3f]  ;;  %s182_s28 = scalar_lea.vmem %s557_s1, %s369_s25 }
  0x1b   : > { %222 = vrot.lane.b32.xlu1 %v376_v2, %s469_s20  ;;  %200 = vrot.lane.b32.xlu0 %v371_v3, %s469_s20 }
  0x1f   : > { %244 = vrot.lane.b32.xlu1 %v381_v4, %s469_s20  ;;  %232 = vrot.lane.b32.xlu0 %v378_v5, %s469_s20 }
  0x89   : > { %v211_v6 = vpop.permute.xlu1 %210  ;;  %v187_v7 = vpop.permute.xlu0 %186 }
  0x8a   : > { %v213_v8 = vsel %vm189_vm0, %v373_v0, %v211_v6  ;;  %v190_v9 = vsel %vm189_vm0, %v184_v1, %v187_v7 }
  0x8b   : > { %v214_v10 = vsel %vm191_vm1, %v213_v8, %v211_v6  ;;  %v192_v11 = vsel %vm191_vm1, %v190_v9, %v187_v7 }
  0x8c   : > { %374 = vst.msk [vmem:[%s182_s28 + $0x18] sm:$0x3f] %vm193_vm2, %v214_v10  ;;  %375 = vst.msk [vmem:[%s182_s28 + $0x20] sm:$0x3f] %vm193_vm2, %v214_v10 }
  0x8d   : > { %194 = vst.msk [vmem:[%s182_s28] sm:$0x3f] %vm193_vm2, %v192_v11  ;;  %370 = vst.msk [vmem:[%s182_s28 + $0x8] sm:$0x3f] %vm193_vm2, %v192_v11  ;;  %v223_v12 = vpop.permute.xlu1 %222  ;;  %v201_v13 = vpop.permute.xlu0 %200 }
  0x8e   : > { %v225_v14 = vsel %vm189_vm0, %v376_v2, %v223_v12  ;;  %v203_v15 = vsel %vm189_vm0, %v371_v3, %v201_v13 }
  0x8f   : > { %v226_v16 = vsel %vm191_vm1, %v225_v14, %v223_v12  ;;  %v204_v17 = vsel %vm191_vm1, %v203_v15, %v201_v13 }
  0x90   : > { %377 = vst.msk [vmem:[%s182_s28 + $0x28] sm:$0x3f] %vm193_vm2, %v226_v16  ;;  %372 = vst.msk [vmem:[%s182_s28 + $0x10] sm:$0x3f] %vm193_vm2, %v204_v17 }
  0x91   : > { %v245_v18 = vpop.permute.xlu1 %244  ;;  %v233_v19 = vpop.permute.xlu0 %232 }
  0x92   : > { %v247_v20 = vsel %vm189_vm0, %v381_v4, %v245_v18  ;;  %v235_v21 = vsel %vm189_vm0, %v378_v5, %v233_v19 }
  0x93   : > { %v248_v22 = vsel %vm191_vm1, %v247_v20, %v245_v18  ;;  %v236_v23 = vsel %vm191_vm1, %v235_v21, %v233_v19 }
  0x94   : > { %382 = vst.msk [vmem:[%s182_s28 + $0x40] sm:$0x3f] %vm193_vm2, %v248_v22  ;;  %379 = vst.msk [vmem:[%s182_s28 + $0x30] sm:$0x3f] %vm193_vm2, %v236_v23 }
  0x95   : > { %380 = vst.msk [vmem:[%s182_s28 + $0x38] sm:$0x3f] %vm193_vm2, %v236_v23 }
  0x96 PF: > { %s11_s10 = sadd.s32 1, %s467_s10   ;;  %s558_s6 = smov %s459_s8 }
  0x97   : > { %p8_p8 = scmp.ge.s32.totalorder %s11_s10, 6   ;;  %s559_s7 = smov %s463_s9 }
  0x98   : > { %s560_s8 = smov %s563_s11  ;;  %s561_s9 = smov %s567_s12 }
  0x99   :  { %10 = sbr.rel (!%p8_p8) target bundleno = 3 (0x3), region = 67 }

</bundles_post_ra>
